<compile_context>
chip_gen: v6e
topology: v6e:2x2x1
jax: 0.10.0
libtpu: 0.0.40
codegen_flags: <defaults>
</compile_context>

<pallas_src>
import functools

import jax
import jax.numpy as jnp
import numpy as np
from jax.experimental import pallas as pl
from jax.experimental.pallas import tpu as pltpu

# ---- LiteMLA default hyper-parameters --------------------------------------
IN_CH = 8
OUT_CH = 8
HEADS = 4
DIM = 4
TD = HEADS * DIM            # 16 channels per q/k/v per scale
SCALES = (1, 3, 5)
N_SCALES = len(SCALES)      # 3
SD = N_SCALES * TD          # 48 scale-major channels per group
GSTRIDE = 64                # lane stride between q / k / v groups (vreg friendly)
W_FUSED = 3 * GSTRIDE       # 192 fused lanes
MAXK = max(SCALES)          # 5
HALF = MAXK // 2            # 2


# -----------------------------------------------------------------------------
# pltpu.roll direction guard: pin down the rotation convention once.
#   +1 -> pltpu.roll(x, s, axis)[i] == x[(i - s) % n]   (jnp.roll convention)
#   -1 -> pltpu.roll(x, s, axis)[i] == x[(i + s) % n]
# -----------------------------------------------------------------------------
_ROLL_SIGN = None


def _roll_sign():
    global _ROLL_SIGN
    if _ROLL_SIGN is not None:
        return _ROLL_SIGN

    def probe(x_ref, o_ref):
        o_ref[...] = pltpu.roll(x_ref[...], 1, axis=0)

    x = jnp.arange(8 * 128, dtype=jnp.float32).reshape(8, 128)
    y = np.asarray(
        pl.pallas_call(probe, out_shape=jax.ShapeDtypeStruct((8, 128), jnp.float32))(x))
    xn = np.asarray(x)
    if np.array_equal(y, np.roll(xn, 1, axis=0)):
        _ROLL_SIGN = 1
    elif np.array_equal(y, np.roll(xn, -1, axis=0)):
        _ROLL_SIGN = -1
    else:
        raise RuntimeError("unexpected pltpu.roll semantics")
    return _ROLL_SIGN


def _shift_amount(offset, length, sign):
    """pltpu.roll shift so that result[t] == x[(t + offset) % length]."""
    return ((-offset) if sign > 0 else offset) % length


# -----------------------------------------------------------------------------
# Kernel: one grid step == `seqs` whole sequences (rows = seqs * T).
#
# Inputs (all f32):
#   x_ref     : (rows, Cin)
#   wqkv_ref  : (Cin + 1, 192)   fused, scale-replicated qkv weight; last row = bias
#   dw_ref    : (MAXK + 1, 192)  depthwise taps (zero-padded to MAXK) + bias row
#   smask_ref : (rows, MAXK)     per-(row, tap) sequence-boundary mask
#   attn_ref  : (2*SD, SD)       [identity(48) ; (scale,head) block-diag mask]
#   wproj_ref : (SD + 1, Cout)   projection weight; last row = bias
# Output:
#   o_ref     : (rows, Cout)
# -----------------------------------------------------------------------------
def litemla_kernel(x_ref, wqkv_ref, dw_ref, smask_ref, attn_ref, wproj_ref,
                   o_ref, *, seqs, seq_len, roll_shifts):
    f32 = jnp.float32
    cin = x_ref.shape[1]

    # ---- fused scale-replicated 1x1 qkv conv (+bias, ReLU): single matmul.
    wqkv = wqkv_ref[...]
    qkv = jnp.dot(x_ref[...], wqkv[:cin, :], preferred_element_type=f32)
    qkv = jnp.maximum(qkv + wqkv[cin:cin + 1, :], 0.0)              # (rows, 192)

    # ---- all depthwise scales in one pass: 5 tap FMAs on XLU-rolled copies
    #      with per-sequence boundary masks, then per-lane bias + ReLU.
    smask = smask_ref[...]
    dw = dw_ref[...]
    agg = qkv * dw[HALF:HALF + 1, :]                                # offset 0 tap
    for r in range(MAXK):
        if r == HALF:
            continue
        sh = pltpu.roll(qkv, roll_shifts[r], axis=0) * smask[:, r:r + 1]
        agg = agg + sh * dw[r:r + 1, :]
    agg = jnp.maximum(agg + dw[MAXK:MAXK + 1, :], 0.0)              # (rows, 192)

    # Lanes inside each group are already scale-major: contiguous 48-lane slices.
    q_all = agg[:, 0 * GSTRIDE:0 * GSTRIDE + SD]
    k_all = agg[:, 1 * GSTRIDE:1 * GSTRIDE + SD]
    v_all = agg[:, 2 * GSTRIDE:2 * GSTRIDE + SD]
    # NOTE: torch.relu(q)/relu(k) after the chunk is idempotent after the
    # aggregation ReLU, so it is dropped.

    attn = attn_ref[...]
    eye_sd = attn[:SD, :]          # identity -> K^T via rhs-transposed matmul
    mask_sd = attn[SD:, :]         # (scale, head) block-diagonal 4x4 mask

    # ---- linear attention, per sequence, batched over scales and heads:
    #      out = V @ (K^T Q), with K^T Q masked to 4x4 diagonal blocks.
    o_parts = []
    for b in range(seqs):
        rs = slice(b * seq_len, (b + 1) * seq_len)
        q_b, k_b, v_b = q_all[rs], k_all[rs], v_all[rs]
        k_t = jax.lax.dot_general(eye_sd, k_b, (((1,), (1,)), ((), ())),
                                  preferred_element_type=f32)        # (48, T)
        m = jnp.dot(k_t, q_b, preferred_element_type=f32) * mask_sd  # (48, 48)
        o_parts.append(jnp.dot(v_b, m, preferred_element_type=f32))  # (T, 48)
    o_all = o_parts[0] if seqs == 1 else jnp.concatenate(o_parts, axis=0)

    # ---- projection (+bias, ReLU): channel order is already scale-major,
    #      matching torch.cat(attention_results, dim=1).
    wproj = wproj_ref[...]
    y = jnp.dot(o_all, wproj[:SD, :], preferred_element_type=f32)
    y = jnp.maximum(y + wproj[SD:SD + 1, :], 0.0)
    o_ref[...] = y.astype(o_ref.dtype)


# -----------------------------------------------------------------------------
# Host-side packing of weights / constant masks into the kernel lane layout.
# -----------------------------------------------------------------------------
def _pack_params(params, rows, seq_len):
    f32 = np.float32
    cin = np.asarray(params["w_qkv"]).shape[1]
    cout = np.asarray(params["w_proj"]).shape[0]

    # fused qkv weight, replicated per scale, grouped q/k/v with 64-lane stride
    w_qkv = np.asarray(params["w_qkv"], f32)             # (48, Cin)
    b_qkv = np.asarray(params["b_qkv"], f32)             # (48,)
    wrep = np.zeros((cin + 1, W_FUSED), f32)
    for g in range(3):
        for s in range(N_SCALES):
            dst = g * GSTRIDE + s * TD
            src = g * TD
            wrep[:cin, dst:dst + TD] = w_qkv[src:src + TD, :].T
            wrep[cin, dst:dst + TD] = b_qkv[src:src + TD]

    # depthwise taps (zero-padded to MAXK per scale) + per-scale bias row
    dw_all = np.zeros((MAXK + 1, W_FUSED), f32)
    for s, scale in enumerate(SCALES):
        wdw = np.asarray(params["dw_w"][s], f32)          # (48, scale)
        bdw = np.asarray(params["dw_b"][s], f32)          # (48,)
        p = scale // 2
        for g in range(3):
            dst = g * GSTRIDE + s * TD
            src = g * TD
            for k in range(scale):
                dw_all[(k - p) + HALF, dst:dst + TD] = wdw[src:src + TD, k]
            dw_all[MAXK, dst:dst + TD] = bdw[src:src + TD]

    # per-(row, tap) sequence-boundary mask
    pos = np.arange(rows) % seq_len
    smask = np.zeros((rows, MAXK), f32)
    for r in range(MAXK):
        off = r - HALF
        smask[:, r] = ((pos + off >= 0) & (pos + off < seq_len)).astype(f32)

    # identity (transpose helper) + (scale, head) block-diagonal mask
    attn = np.zeros((2 * SD, SD), f32)
    attn[:SD, :] = np.eye(SD, dtype=f32)
    for blk in range(SD // DIM):
        attn[SD + blk * DIM:SD + (blk + 1) * DIM, blk * DIM:(blk + 1) * DIM] = 1.0

    # projection weight (+bias row)
    wproj = np.concatenate(
        [np.asarray(params["w_proj"], f32).T,
         np.asarray(params["b_proj"], f32).reshape(1, cout)], axis=0)

    return (jnp.asarray(wrep), jnp.asarray(dw_all), jnp.asarray(smask),
            jnp.asarray(attn), jnp.asarray(wproj))


# -----------------------------------------------------------------------------
# Wrapper: row blocking + pallas_call.
# -----------------------------------------------------------------------------
def litemla_pallas(x, params, *, rows_target=256):
    B, T, Cin = x.shape
    Cout = np.asarray(params["b_proj"]).shape[0]

    # How many whole sequences share one grid step: big enough to amortise
    # per-step overhead (~0.35us), small enough to leave multiple "parallel"
    # grid steps for megacore sharding when B is large.
    if T % 8 == 0:
        max_seqs = max(1, rows_target // T)
        seqs = 1
        for d in range(1, B + 1):
            if B % d == 0 and d <= max_seqs:
                seqs = d
    else:
        seqs = B                    # single block: block dims == full array dims
    rows = seqs * T
    n_blocks = B // seqs

    wrep, dw_all, smask, attn, wproj = _pack_params(params, rows, T)

    sign = _roll_sign()
    roll_shifts = tuple(_shift_amount(r - HALF, rows, sign) for r in range(MAXK))

    kernel = functools.partial(litemla_kernel, seqs=seqs, seq_len=T,
                               roll_shifts=roll_shifts)
    x_flat = x.reshape(B * T, Cin).astype(jnp.float32)

    out = pl.pallas_call(
        kernel,
        out_shape=jax.ShapeDtypeStruct((B * T, Cout), jnp.float32),
        grid_spec=pltpu.PrefetchScalarGridSpec(
            num_scalar_prefetch=0,
            grid=(n_blocks,),
            in_specs=[
                pl.BlockSpec((rows, Cin), lambda i: (i, 0)),
                pl.BlockSpec(wrep.shape, lambda i: (0, 0)),
                pl.BlockSpec(dw_all.shape, lambda i: (0, 0)),
                pl.BlockSpec(smask.shape, lambda i: (0, 0)),
                pl.BlockSpec(attn.shape, lambda i: (0, 0)),
                pl.BlockSpec(wproj.shape, lambda i: (0, 0)),
            ],
            out_specs=pl.BlockSpec((rows, Cout), lambda i: (i, 0)),
        ),
        compiler_params=pltpu.CompilerParams(
            dimension_semantics=("parallel",)),
    )(x_flat, wrep, dw_all, smask, attn, wproj)
    return out.reshape(B, T, Cout)


# -----------------------------------------------------------------------------
# Pure-JAX reference that mirrors the PyTorch forward op-for-op.
# -----------------------------------------------------------------------------
def litemla_ref(x, params):
    B, T, _ = x.shape
    xt = jnp.swapaxes(x, 1, 2)                                   # (B, C, T)
    qkv = jnp.einsum("oc,bct->bot", params["w_qkv"], xt) + params["b_qkv"][None, :, None]
    qkv = jnp.maximum(qkv, 0.0)
    results = []
    for s, scale in enumerate(SCALES):
        p = scale // 2
        w = params["dw_w"][s]
        b = params["dw_b"][s]
        xp = jnp.pad(qkv, ((0, 0), (0, 0), (p, p)))
        out = jnp.zeros_like(qkv)
        for k in range(scale):
            out = out + xp[:, :, k:k + T] * w[None, :, k:k + 1]
        out = jnp.maximum(out + b[None, :, None], 0.0)
        q, kk, v = jnp.split(out, 3, axis=1)
        q = jnp.maximum(q.reshape(B, HEADS, DIM, T), 0.0)
        kk = jnp.maximum(kk.reshape(B, HEADS, DIM, T), 0.0)
        v = v.reshape(B, HEADS, DIM, T)
        kv = jnp.matmul(jnp.swapaxes(kk, -2, -1), v)             # (B,H,T,T)
        results.append(jnp.matmul(q, kv))                        # (B,H,dim,T)
    cat = jnp.concatenate(results, axis=1).reshape(B, -1, T)     # (B, 48, T)
    y = jnp.einsum("oc,bct->bot", params["w_proj"], cat) + params["b_proj"][None, :, None]
    y = jnp.maximum(y, 0.0)
    return jnp.swapaxes(y, 1, 2)


# -----------------------------------------------------------------------------
if __name__ == "__main__":
    key = jax.random.PRNGKey(0)
    keys = iter(jax.random.split(key, 16))

    def nrm(shape, scale=0.2):
        return scale * jax.random.normal(next(keys), shape, jnp.float32)

    B, T = 2, 16
    params = {
        "w_qkv": nrm((3 * TD, IN_CH)),
        "b_qkv": nrm((3 * TD,), 0.1),
        "dw_w": [nrm((3 * TD, s)) for s in SCALES],
        "dw_b": [nrm((3 * TD,), 0.1) for _ in SCALES],
        "w_proj": nrm((OUT_CH, N_SCALES * TD)),
        "b_proj": nrm((OUT_CH,), 0.1),
    }
    x = jax.random.normal(next(keys), (B, T, IN_CH), jnp.float32)

    out = litemla_pallas(x, params)
    jax.block_until_ready(out)

    ref = litemla_ref(x, params)
    np.testing.assert_allclose(np.asarray(out), np.asarray(ref), rtol=1e-3, atol=1e-3)

    print("KERNEL_OK")
</pallas_src>

<mosaic_0001>
module attributes {stable_mosaic.version = 11 : i64} {
  func.func @probe(%arg0: memref<8x128xf32, #tpu.memory_space<vmem>>, %arg1: memref<8x128xf32, #tpu.memory_space<vmem>>) attributes {dimension_semantics = [], scalar_prefetch = 0 : i64, scratch_operands = 0 : i64, tpu.core_type = #tpu.core_type<tc>} {
    %c0 = arith.constant 0 : index
    %c0_0 = arith.constant 0 : index
    %0 = vector.load %arg0[%c0, %c0_0] : memref<8x128xf32, #tpu.memory_space<vmem>>, vector<8x128xf32>
    %c1_i32 = arith.constant 1 : i32
    %1 = tpu.dynamic_rotate %0 by %c1_i32 dim 0 : vector<8x128xf32>, i32 -> vector<8x128xf32>
    %c0_1 = arith.constant 0 : index
    %c0_2 = arith.constant 0 : index
    %2 = vector.load %arg1[%c0_1, %c0_2] : memref<8x128xf32, #tpu.memory_space<vmem>>, vector<8x128xf32>
    tpu.vector_store %arg1[%c0_1, %c0_2], %1 {strides = array<i32>} : memref<8x128xf32, #tpu.memory_space<vmem>>, vector<8x128xf32>,
    return
  }
}

</mosaic_0001>

<bundles_post_ra>
// kernel: tpu_custom_call.1
= control target key start
LH: loop header
LB: loop body
LE: loop exit
PB: predicated region body
PF: predicated region fallthrough
CT: control target
= control target key end

     0   :  { %6 = vsyncpa [#allocation3], 0  ;;  %s103_s0 = inlined_call_operand.hbm [shape: f32[8,128], index: 0, kind: input, shape index: {}]   ;;  %s104_s1 = inlined_call_operand.hbm [shape: f32[8,128], index: 1, kind: output, shape index: {}]  }
   0x1   :  { %7 = vsyncpa [#allocation4], 0  ;;  %s85_s6 = smov [#allocation2]  }
   0x2   :  { %s14_s7 = sshll.u32 %s85_s6, 4  ;;  %s15_s7 = int_to_ptr.vmem [resolvable:$true] %s14_s7 }
   0x3   :  { %s49_s8 = scalar_lea.vmem %s15_s7, 128  ;;  %p54_p1 = scmp.lt.s32.totalorder %s15_s7, %s15_s7 }
   0x4   :  { %p50_p0 = scmp.ne.s32.totalorder %s15_s7, %s49_s8  ;;  %p55_p2 = scmp.lt.s32.totalorder %s49_s8, %s49_s8 }
   0x6   :  { %p56_p3 = por %p55_p2, %p54_p1 }
   0x8   :  { %p57_p4 = pnand %p56_p3, %p50_p0 }
   0xa   :  { %60 = shalt.err (!%p57_p4)
}
   0xb   :  { %17 = dma.hbm_to_vmem [thread:$0]  %s103_s0, 128, %s15_s7, [#allocation3]  }
   0xc   :  { %81 = dma.done.wait [#allocation3], 128  }
   0xd   :  { %82 = vsyncadd [#allocation3], 4294967168  ;;  %s86_s11 = smov [#allocation5]   ;;  %v21_v0 = vld [vmem:[#allocation2] sm:$0xff] }
   0xe   :  { %s30_s12 = sshll.u32 %s86_s11, 4  ;;  %v22_v1 = vrot.slane %v21_v0, 7  ;;  %s31_s12 = int_to_ptr.vmem [resolvable:$true] %s30_s12 }
   0xf   :  { %s61_s13 = scalar_lea.vmem %s31_s12, 128  ;;  %p66_p6 = scmp.lt.s32.totalorder %s31_s12, %s31_s12 }
  0x10   :  { %23 = vst [vmem:[#allocation5] sm:$0xff] %v22_v1  ;;  %p62_p5 = scmp.ne.s32.totalorder %s31_s12, %s61_s13  ;;  %p67_p7 = scmp.lt.s32.totalorder %s61_s13, %s61_s13 }
  0x12   :  { %p68_p8 = por %p67_p7, %p66_p6 }
  0x14   :  { %p69_p9 = pnand %p68_p8, %p62_p5 }
  0x16   :  { %72 = shalt.err (!%p69_p9)
}
  0x17   :  { %33 = dma.vmem_to_hbm [thread:$0]  %s31_s12, 128, %s104_s1, [#allocation4]  }
  0x18   :  { %83 = dma.done.wait [#allocation4], 128  }
  0x19   :  { %84 = vsyncadd [#allocation4], 4294967168 }
  0x1a   :  { %37 = vsyncpa [#allocation3], 1 }
  0x1b   :  { %38 = vsyncpa [#allocation4], 1 }

</bundles_post_ra>
